<compile_context>
chip_gen: v6e
topology: v6e:2x2x1
jax: 0.10.0
libtpu: 0.0.40
codegen_flags: <defaults>
</compile_context>

<pallas_src>
import jax
import jax.numpy as jnp
from jax.experimental import pallas as pl
from jax.experimental.pallas import tpu as pltpu

IN_FEATURES = 69 * 2      # 138
OUT_FEATURES = 69
TB_MAX = 4096             # batch tile rows (multiple of 8); safe on v5e/v6e/v7x


def _round_up(n, m):
    return ((n + m - 1) // m) * m


def _linear_relu_kernel(x_ref, w_ref, b_ref, o_ref):
    # x_ref: (TB, 138)  w_ref: (138, 69)  b_ref: (1, 69)  o_ref: (TB, 69)
    acc = jnp.dot(x_ref[...], w_ref[...], preferred_element_type=jnp.float32)
    acc = acc + b_ref[...]                      # bias broadcast over batch rows
    o_ref[...] = jnp.maximum(acc, 0.0).astype(o_ref.dtype)


def prepare_params(w, b):
    """One-time parameter preprocessing (hoisted out of the forward path).

    w: (69, 138) float32 (PyTorch nn.Linear layout), b: (69,) float32.
    Returns w_t: (138, 69) and b_row: (1, 69) — no padded columns.
    """
    w_t = w.T.astype(jnp.float32)                         # (138, 69)
    b_row = b.astype(jnp.float32).reshape(1, OUT_FEATURES)
    return w_t, b_row


def _choose_tb(B):
    """Batch tile: multiple of 8, >=2 grid steps when B > 8 (v7x megacore),
    capped at TB_MAX.  For tiny batches use the full batch as one block
    (full-array blocks are exempt from the 8-row divisibility rule)."""
    if B <= 8:
        return B
    return min(TB_MAX, _round_up(pl.cdiv(B, 2), 8))


def fit_forward(x, w_t, b_row):
    """x: (B, 138) f32; returns ReLU(x @ W.T + b): (B, 69) f32."""
    B = x.shape[0]
    TB = _choose_tb(B)
    grid = pl.cdiv(B, TB)       # ragged last block handled by Pallas clamping

    cost = pl.CostEstimate(
        flops=2 * B * IN_FEATURES * OUT_FEATURES,
        transcendentals=0,
        bytes_accessed=4 * (B * (IN_FEATURES + OUT_FEATURES)
                            + IN_FEATURES * OUT_FEATURES + OUT_FEATURES),
    )

    return pl.pallas_call(
        _linear_relu_kernel,
        out_shape=jax.ShapeDtypeStruct((B, OUT_FEATURES), jnp.float32),
        grid=(grid,),
        in_specs=[
            # x: one TB-row block per grid step (pipelined HBM<->VMEM)
            pl.BlockSpec((TB, IN_FEATURES), lambda i: (i, 0)),
            # weight/bias: same block every step -> VMEM-resident, one DMA
            pl.BlockSpec((IN_FEATURES, OUT_FEATURES), lambda i: (0, 0)),
            pl.BlockSpec((1, OUT_FEATURES), lambda i: (0, 0)),
        ],
        out_specs=pl.BlockSpec((TB, OUT_FEATURES), lambda i: (i, 0)),
        compiler_params=pltpu.CompilerParams(
            dimension_semantics=("parallel",)),   # shard batch grid across TCs
        cost_estimate=cost,
    )(x, w_t, b_row)


def init_params(key):
    # PyTorch nn.Linear default init: U(-1/sqrt(fan_in), 1/sqrt(fan_in)).
    kw, kb = jax.random.split(key)
    bound = 1.0 / jnp.sqrt(jnp.float32(IN_FEATURES))
    w = jax.random.uniform(kw, (OUT_FEATURES, IN_FEATURES),
                           minval=-bound, maxval=bound, dtype=jnp.float32)
    b = jax.random.uniform(kb, (OUT_FEATURES,),
                           minval=-bound, maxval=bound, dtype=jnp.float32)
    return w, b


if __name__ == "__main__":
    key = jax.random.PRNGKey(0)
    k_x, k_p, k_small, k_big = jax.random.split(key, 4)

    w, b = init_params(k_p)
    w_t, b_row = prepare_params(w, b)            # one-time, outside forward

    # Small demo batch (matches the PyTorch module's usage); single block.
    batch = 8
    x = jax.random.normal(k_x, (batch, IN_FEATURES), dtype=jnp.float32)
    out = jax.block_until_ready(fit_forward(x, w_t, b_row))
    ref = jnp.maximum(x @ w.T + b, 0.0)
    assert out.shape == (batch, OUT_FEATURES)
    assert jnp.allclose(out, ref, atol=1e-5, rtol=1e-5)

    # Tiny non-multiple-of-8 batch exercises the full-array-block path.
    xs = jax.random.normal(k_small, (5, IN_FEATURES), dtype=jnp.float32)
    outs = jax.block_until_ready(fit_forward(xs, w_t, b_row))
    refs = jnp.maximum(xs @ w.T + b, 0.0)
    assert outs.shape == (5, OUT_FEATURES)
    assert jnp.allclose(outs, refs, atol=1e-5, rtol=1e-5)

    # Larger, non-tile-multiple batch exercises the multi-step grid with a
    # ragged (clamped) boundary block and v7x 2-core sharding.
    big = 1030
    xb = jax.random.normal(k_big, (big, IN_FEATURES), dtype=jnp.float32)
    outb = jax.block_until_ready(fit_forward(xb, w_t, b_row))
    refb = jnp.maximum(xb @ w.T + b, 0.0)
    assert outb.shape == (big, OUT_FEATURES)
    assert jnp.allclose(outb, refb, atol=1e-4, rtol=1e-5)

    print("KERNEL_OK")
</pallas_src>

<mosaic_0001>
module attributes {stable_mosaic.version = 11 : i64} {
  func.func @_linear_relu_kernel(%arg0: i32, %arg1: memref<8x138xf32, #tpu.memory_space<vmem>>, %arg2: memref<138x69xf32, #tpu.memory_space<vmem>>, %arg3: memref<1x69xf32, #tpu.memory_space<vmem>>, %arg4: memref<8x69xf32, #tpu.memory_space<vmem>>) attributes {dimension_semantics = [#tpu.dimension_semantics<parallel>], iteration_bounds = array<i64: 1>, scalar_prefetch = 0 : i64, scratch_operands = 0 : i64, tpu.core_type = #tpu.core_type<tc>, window_params = [{transform_indices = @transform_0, window_bounds = array<i64: 8, 138>}, {pipeline_mode = #tpu.pipeline_mode<synchronous>, transform_indices = @transform_1, window_bounds = array<i64: 138, 69>}, {pipeline_mode = #tpu.pipeline_mode<synchronous>, transform_indices = @transform_2, window_bounds = array<i64: 1, 69>}, {transform_indices = @transform_3, window_bounds = array<i64: 8, 69>}]} {
    %c0 = arith.constant 0 : index
    %c0_0 = arith.constant 0 : index
    %0 = vector.load %arg1[%c0, %c0_0] : memref<8x138xf32, #tpu.memory_space<vmem>>, vector<8x138xf32>
    %c0_1 = arith.constant 0 : index
    %c0_2 = arith.constant 0 : index
    %1 = vector.load %arg2[%c0_1, %c0_2] : memref<138x69xf32, #tpu.memory_space<vmem>>, vector<138x69xf32>
    %cst = arith.constant dense<0.000000e+00> : vector<8x69xf32>
    %2 = tpu.matmul %0, %1, %cst {dimension_numbers = #tpu.dot_dimension_numbers<[1], [0], [0], [1], [0, 0, 1, 1], [], []>} : vector<8x138xf32>, vector<138x69xf32>, vector<8x69xf32> -> vector<8x69xf32>
    %c0_3 = arith.constant 0 : index
    %c0_4 = arith.constant 0 : index
    %3 = vector.load %arg3[%c0_3, %c0_4] : memref<1x69xf32, #tpu.memory_space<vmem>>, vector<1x69xf32>
    %4 = vector.broadcast %3 : vector<1x69xf32> to vector<8x69xf32>
    %5 = arith.addf %2, %4 : vector<8x69xf32>
    %cst_5 = arith.constant 0.000000e+00 : f32
    %6 = vector.broadcast %cst_5 : f32 to vector<8x69xf32>
    %7 = arith.maximumf %5, %6 : vector<8x69xf32>
    %c0_6 = arith.constant 0 : index
    %c0_7 = arith.constant 0 : index
    %8 = vector.load %arg4[%c0_6, %c0_7] : memref<8x69xf32, #tpu.memory_space<vmem>>, vector<8x69xf32>
    tpu.vector_store %arg4[%c0_6, %c0_7], %7 {strides = array<i32>} : memref<8x69xf32, #tpu.memory_space<vmem>>, vector<8x69xf32>,
    return
  }
  func.func @transform_0(%arg0: i32) -> (i32, i32) {
    %c0_i32 = arith.constant 0 : i32
    %c0_i32_0 = arith.constant 0 : i32
    return %arg0, %c0_i32 : i32, i32
  }
  func.func @transform_1(%arg0: i32) -> (i32, i32) {
    %c0_i32 = arith.constant 0 : i32
    %c0_i32_0 = arith.constant 0 : i32
    %c0_i32_1 = arith.constant 0 : i32
    return %c0_i32, %c0_i32_0 : i32, i32
  }
  func.func @transform_2(%arg0: i32) -> (i32, i32) {
    %c0_i32 = arith.constant 0 : i32
    %c0_i32_0 = arith.constant 0 : i32
    %c0_i32_1 = arith.constant 0 : i32
    return %c0_i32, %c0_i32_0 : i32, i32
  }
  func.func @transform_3(%arg0: i32) -> (i32, i32) {
    %c0_i32 = arith.constant 0 : i32
    %c0_i32_0 = arith.constant 0 : i32
    return %arg0, %c0_i32 : i32, i32
  }
}

</mosaic_0001>

<bundles_post_ra>
// kernel: tpu_custom_call.1
= control target key start
LH: loop header
LB: loop body
LE: loop exit
PB: predicated region body
PF: predicated region fallthrough
CT: control target
= control target key end

     0   :  { %8 = vsyncpa [#allocation3], 0  ;;  %s278_s0 = inlined_call_operand.hbm [shape: f32[8,138], index: 0, kind: input, shape index: {}]   ;;  %s279_s1 = inlined_call_operand.hbm [shape: f32[138,69], index: 1, kind: input, shape index: {}]   ;;  %s280_s2 = inlined_call_operand.vmem [shape: f32[1,69], index: 2, kind: input, shape index: {}]   ;;  %s281_s3 = inlined_call_operand.hbm [shape: f32[8,69], index: 3, kind: output, shape index: {}]  }
   0x1   :  { %9 = vsyncpa [#allocation6], 0 }
   0x2   :  { %10 = vsyncpa [#allocation4], 0  ;;  %s240_s12 = smov [#allocation2]   ;;  %s241_s14 = smov [#allocation5]  }
   0x3   :  { %s17_s13 = sshll.u32 %s240_s12, 4  ;;  %s26_s15 = sshll.u32 %s241_s14, 4  ;;  %s18_s13 = int_to_ptr.vmem [resolvable:$true] %s17_s13  ;;  %s27_s15 = int_to_ptr.vmem [resolvable:$true] %s26_s15 }
   0x4   :  { %s182_s16 = scalar_lea.vmem %s18_s13, 256  ;;  %p187_p1 = scmp.lt.s32.totalorder %s18_s13, %s18_s13 }
   0x5   :  { %p183_p0 = scmp.ne.s32.totalorder %s18_s13, %s182_s16  ;;  %p188_p2 = scmp.lt.s32.totalorder %s182_s16, %s182_s16 }
   0x7   :  { %p189_p3 = por %p188_p2, %p187_p1 }
   0x9   :  { %p190_p4 = pnand %p189_p3, %p183_p0 }
   0xb   :  { %193 = shalt.err (!%p190_p4)
}
   0xc   :  { %20 = dma.hbm_to_vmem [thread:$0]  %s278_s0, 256, %s18_s13, [#allocation3]  }
   0xd   :  { %s202_s19 = scalar_lea.vmem %s27_s15, 2304  ;;  %p207_p6 = scmp.lt.s32.totalorder %s27_s15, %s27_s15 }
   0xe   :  { %p203_p5 = scmp.ne.s32.totalorder %s27_s15, %s202_s19  ;;  %p208_p7 = scmp.lt.s32.totalorder %s202_s19, %s202_s19 }
  0x10   :  { %p209_p8 = por %p208_p7, %p207_p6 }
  0x12   :  { %p210_p9 = pnand %p209_p8, %p203_p5 }
  0x14   :  { %213 = shalt.err (!%p210_p9)
}
  0x15   :  { %s242_s20 = smov 128   ;;  %s243_s21 = smov 8  }
  0x16   :  { %32 = dma.hbm_to_vmem [thread:$0]  %s279_s1, 2304, %s27_s15, [#allocation6], %s242_s20, %s242_s20, %s243_s21  }
  0x17   :  { %234 = dma.done.wait [#allocation3], 256  }
  0x18   :  { %235 = vsyncadd [#allocation3], 4294967040 }
  0x19   :  { %236 = dma.done.wait [#allocation6], 2304  }
  0x1a   :  { %237 = vsyncadd [#allocation6], 4294964992  ;;  %v244_v0 = vmov 0.0   ;;  %v58_v1 = vld [vmem:[#allocation5 + $0x78] sm:$0xff]  ;;  %v57_v2 = vld [vmem:[#allocation5 + $0x70] sm:$0xff]  ;;  %vm68_vm0 = vcmask 80896  }
  0x1b   :  { %76 = vmatprep.subr.mxu0 %v244_v0  ;;  %v56_v3 = vld [vmem:[#allocation5 + $0x68] sm:$0xff]  ;;  %v55_v4 = vld [vmem:[#allocation5 + $0x60] sm:$0xff]  ;;  %v54_v5 = vld [vmem:[#allocation5 + $0x58] sm:$0xff]  ;;  %vm72_vm1 = vcmask 1041408   ;;  %s245_s24 = smov [#allocation7]   ;;  %vm147_vm2 = vcmask 564224  }
  0x1c   :  { %77 = vmatpush1.msra.mxu0 %v58_v1  ;;  %v42_v6 = vld [vmem:[#allocation2 + $0x8] sm:$0xff]  ;;  %v53_v7 = vld [vmem:[#allocation5 + $0x50] sm:$0xff]  ;;  %v52_v8 = vld [vmem:[#allocation5 + $0x48] sm:$0xff]  ;;  %s155_s25 = sshll.u32 %s245_s24, 4  ;;  %s156_s25 = int_to_ptr.vmem [resolvable:$true] %s155_s25 }
  0x1d   :  { %78 = vmatprep.subr.mxu0 %v244_v0  ;;  %167 = vmatprep.mubr.msk.f32.mxu0 %vm68_vm0, %v42_v6  ;;  %v51_v9 = vld [vmem:[#allocation5 + $0x40] sm:$0xff]  ;;  %v50_v10 = vld [vmem:[#allocation5 + $0x38] sm:$0xff]  ;;  %v49_v11 = vld [vmem:[#allocation5 + $0x30] sm:$0xff]  ;;  %s214_s26 = scalar_lea.vmem %s156_s25, 128  ;;  %p219_p11 = scmp.lt.s32.totalorder %s156_s25, %s156_s25 }
  0x1e   :  { %79 = vmatpush1.msra.mxu0 %v57_v2  ;;  %v48_v12 = vld [vmem:[#allocation5 + $0x28] sm:$0xff]  ;;  %v47_v13 = vld [vmem:[#allocation5 + $0x20] sm:$0xff]  ;;  %v46_v14 = vld [vmem:[#allocation5 + $0x18] sm:$0xff]  ;;  %p215_p10 = scmp.ne.s32.totalorder %s156_s25, %s214_s26  ;;  %p220_p12 = scmp.lt.s32.totalorder %s214_s26, %s214_s26 }
  0x1f   :  { %80 = vmatprep.subr.mxu0 %v244_v0  ;;  %v45_v15 = vld [vmem:[#allocation5 + $0x10] sm:$0xff]  ;;  %v44_v16 = vld [vmem:[#allocation5 + $0x8] sm:$0xff]  ;;  %v43_v17 = vld [vmem:[#allocation5] sm:$0xff] }
  0x20   :  { %81 = vmatpush1.msra.mxu0 %v56_v3  ;;  %v60_v18 = vld [vmem:[#allocation5 + $0x88] sm:$0x3]  ;;  %v59_v19 = vld [vmem:[#allocation5 + $0x80] sm:$0xff]  ;;  %v41_v20 = vld [vmem:[#allocation2] sm:$0xff]  ;;  %p221_p13 = por %p220_p12, %p219_p11 }
  0x21   :  { %82 = vmatprep.subr.mxu0 %v244_v0  ;;  %v165_v21 = vld [vmem:[%s280_s2] ss:$0 sm:$0xff] }
  0x22   :  { %83 = vmatpush1.msra.mxu0 %v55_v4  ;;  %p222_p0 = pnand %p221_p13, %p215_p10 }
  0x23   :  { %84 = vmatprep.subr.mxu0 %v244_v0 }
  0x24   :  { %85 = vmatpush1.msra.mxu0 %v54_v5 }
  0x25   :  { %86 = vmatprep.subr.mxu0 %v244_v0 }
  0x26   :  { %87 = vmatpush1.msra.mxu0 %v53_v7 }
  0x27   :  { %88 = vmatprep.subr.mxu0 %v244_v0 }
  0x28   :  { %89 = vmatpush1.msra.mxu0 %v52_v8 }
  0x29   :  { %90 = vmatprep.subr.mxu0 %v244_v0 }
  0x2a   :  { %91 = vmatpush1.msra.mxu0 %v51_v9 }
  0x2b   :  { %92 = vmatprep.subr.mxu0 %v244_v0 }
  0x2c   :  { %93 = vmatpush1.msra.mxu0 %v50_v10 }
  0x2d   :  { %94 = vmatprep.subr.mxu0 %v244_v0 }
  0x2e   :  { %95 = vmatpush1.msra.mxu0 %v49_v11 }
  0x2f   :  { %96 = vmatprep.subr.mxu0 %v244_v0 }
  0x30   :  { %97 = vmatpush1.msra.mxu0 %v48_v12 }
  0x31   :  { %98 = vmatprep.subr.mxu0 %v244_v0 }
  0x32   :  { %99 = vmatpush1.msra.mxu0 %v47_v13 }
  0x33   :  { %100 = vmatprep.subr.mxu0 %v244_v0 }
  0x34   :  { %101 = vmatpush1.msra.mxu0 %v46_v14 }
  0x35   :  { %102 = vmatprep.subr.mxu0 %v244_v0 }
  0x36   :  { %103 = vmatpush1.msra.mxu0 %v45_v15 }
  0x37   :  { %104 = vmatprep.subr.mxu0 %v244_v0 }
  0x38   :  { %105 = vmatpush1.msra.mxu0 %v44_v16 }
  0x39   :  { %106 = vmatprep.subr.mxu0 %v244_v0 }
  0x3a   :  { %107 = vmatpush1.msra.mxu0 %v43_v17 }
  0x3b   :  { %136 = vmatprep.subr.mxu0 %v244_v0 }
  0x3c   :  { %166 = vmatpush2.msk.msra.mxu0 %vm72_vm1, %v60_v18 }
  0x3d   :  { %138 = vmatprep.subr.mxu0 %v244_v0 }
  0x3e   :  { %139 = vmatpush2.msra.mxu0 %v59_v19 }
  0x3f   :  { %141 = vmatmul.mubr.f32.vlgmr.msra.gmra.mxu0 %v41_v20 }
  0xff   :  { %v142_v22 = vpop.f32.mrf.mxu0 }
 0x100   :  { %v143_v23 = vadd.f32 %v165_v21, %v142_v22 }
 0x101   :  { %v144_v24 = vpop.f32.mrf.mxu0 }
 0x102   :  { %v146_v25 = vmax.f32 %v143_v23, 0.0 }
 0x104   :  { %148 = vst.msk [vmem:[#allocation7] sm:$0xff] %vm147_vm2, %v146_v25 }
 0x105   :  { %225 = shalt.err (!%p222_p0)
}
 0x106   :  { %158 = dma.vmem_to_hbm [thread:$0]  %s156_s25, 128, %s281_s3, [#allocation4]  }
 0x107   :  { %238 = dma.done.wait [#allocation4], 128  }
 0x108   :  { %239 = vsyncadd [#allocation4], 4294967168 }
 0x109   :  { %162 = vsyncpa [#allocation3], 1 }
 0x10a   :  { %163 = vsyncpa [#allocation6], 1 }
 0x10b   :  { %164 = vsyncpa [#allocation4], 1 }

</bundles_post_ra>
